<compile_context>
chip_gen: v7x
topology: tpu7x:2x2x1
jax: 0.10.0
libtpu: 0.0.40
codegen_flags: <defaults>
</compile_context>

<pallas_src>
import functools
import math

import jax
import jax.numpy as jnp
import numpy as np
from jax.experimental import pallas as pl
from jax.experimental.pallas import tpu as pltpu


def mha_kernel(x_ref, wqkv_ref, bqkv_ref, wout_ref, bout_ref, gamma_ref,
               beta_ref, o_ref, attn_ref, *, n_heads, d_head, scale):
    B, S, D = x_ref.shape
    HD = n_heads * d_head

    x = x_ref[...].reshape(B * S, D)                         # (B*S, D) f32

    # --- fused QKV projection: bf16 MXU operands, f32 accumulation ---
    qkv = jnp.dot(x.astype(jnp.bfloat16), wqkv_ref[...],
                  preferred_element_type=jnp.float32) + bqkv_ref[0]
    qkv = qkv.reshape(B, S, 3 * HD)                          # (B, S, 3HD) f32

    inv_scale = 1.0 / math.sqrt(d_head)

    # --- per-head attention via static lane slices (no transposes) ---
    for h in range(n_heads):
        lo = h * d_head
        q = qkv[:, :, lo:lo + d_head]                        # (B, S, Dh)
        if scale:
            q = q * inv_scale                                # scale folded into q
        q = q.astype(jnp.bfloat16)
        k = qkv[:, :, HD + lo:HD + lo + d_head].astype(jnp.bfloat16)
        v = qkv[:, :, 2 * HD + lo:2 * HD + lo + d_head].astype(jnp.bfloat16)

        scores = jnp.einsum('bqd,bkd->bqk', q, k,
                            preferred_element_type=jnp.float32)   # (B,S,S) f32
        m = jnp.max(scores, axis=-1, keepdims=True)
        p = jnp.exp(scores - m)                                   # unnormalized
        l = jnp.sum(p, axis=-1, keepdims=True)                    # (B,S,1)
        pv = jnp.einsum('bqk,bkd->bqd', p.astype(jnp.bfloat16), v,
                        preferred_element_type=jnp.float32)       # (B,S,Dh)
        # normalize after PV: divide S*Dh elements (EUP reciprocal), not S*S.
        attn_ref[:, :, lo:lo + d_head] = pv * pl.reciprocal(l, approx=True)

    attn = attn_ref[...].reshape(B * S, HD)

    # --- output projection + residual + LayerNorm (f32 math) ---
    out = jnp.dot(attn.astype(jnp.bfloat16), wout_ref[...],
                  preferred_element_type=jnp.float32) + bout_ref[0]
    res = x + out                                             # (B*S, D)
    mu = jnp.mean(res, axis=-1, keepdims=True)
    var = jnp.mean(res * res, axis=-1, keepdims=True) - mu * mu   # one pass
    norm = (res - mu) * jax.lax.rsqrt(var + 1e-5)
    y = norm * gamma_ref[0] + beta_ref[0]
    o_ref[...] = y.reshape(B, S, D).astype(o_ref.dtype)


def _vmem_limit_bytes(block_b, S, D, HD):
    # Rough per-step footprint: double-buffered x/out blocks (f32), resident
    # bf16 weights, f32 qkv slab, per-head scores + attn scratch, plus
    # generous headroom for Mosaic temporaries/relayouts.
    act = 4 * block_b * S * (2 * D + 4 * HD + 2 * S)
    wts = 2 * (3 * D * HD + HD * D) + 4 * (3 * HD + 3 * D)
    est = 4 * (act + wts)
    return int(min(max(est, 32 * 1024 * 1024), 48 * 1024 * 1024))


def multi_head_attention(x, params, *, n_heads, d_head, scale=True,
                         block_b=None):
    bs, S, D = x.shape
    HD = n_heads * d_head

    if block_b is None:
        # Target >= ~256 rows per grid step (amortize ~0.35us/step overhead,
        # fill the MXU M-dim) while keeping the grid evenly divisible.
        target = max(1, 256 // S)
        block_b = 1
        for cand in range(1, bs + 1):
            if bs % cand == 0 and cand <= target:
                block_b = cand
    assert bs % block_b == 0
    grid = (bs // block_b,)

    # bf16 weights at the pallas_call boundary: halves weight DMA + VMEM;
    # matmuls accumulate in f32 inside the kernel.
    w_qkv = params["w_qkv"].astype(jnp.bfloat16)
    w_out = params["w_out"].astype(jnp.bfloat16)

    kernel = functools.partial(mha_kernel, n_heads=n_heads, d_head=d_head,
                               scale=scale)

    return pl.pallas_call(
        kernel,
        out_shape=jax.ShapeDtypeStruct((bs, S, D), jnp.float32),
        grid_spec=pltpu.PrefetchScalarGridSpec(
            num_scalar_prefetch=0,
            grid=grid,
            in_specs=[
                pl.BlockSpec((block_b, S, D), lambda b: (b, 0, 0)),   # x
                pl.BlockSpec((D, 3 * HD), lambda b: (0, 0)),          # W_qkv (bf16)
                pl.BlockSpec((1, 3 * HD), lambda b: (0, 0)),          # b_qkv
                pl.BlockSpec((HD, D), lambda b: (0, 0)),              # W_out (bf16)
                pl.BlockSpec((1, D), lambda b: (0, 0)),               # b_out
                pl.BlockSpec((1, D), lambda b: (0, 0)),               # ln gamma
                pl.BlockSpec((1, D), lambda b: (0, 0)),               # ln beta
            ],
            out_specs=pl.BlockSpec((block_b, S, D), lambda b: (b, 0, 0)),
            scratch_shapes=[pltpu.VMEM((block_b, S, HD), jnp.float32)],
        ),
        compiler_params=pltpu.CompilerParams(
            dimension_semantics=("parallel",),
            vmem_limit_bytes=_vmem_limit_bytes(block_b, S, D, HD),
        ),
    )(x, w_qkv, params["b_qkv"], w_out, params["b_out"],
      params["gamma"], params["beta"])


def reference(x, params, *, n_heads, d_head, scale=True):
    """Pure-JAX f32 reference reproducing the PyTorch forward exactly."""
    bs, S, D = x.shape
    HD = n_heads * d_head
    qkv = x @ params["w_qkv"] + params["b_qkv"][0]
    wq, wk, wv = jnp.split(qkv, 3, axis=-1)
    q = wq.reshape(bs, S, n_heads, d_head).transpose(0, 2, 1, 3)
    k = wk.reshape(bs, S, n_heads, d_head).transpose(0, 2, 3, 1)
    v = wv.reshape(bs, S, n_heads, d_head).transpose(0, 2, 1, 3)
    scores = q @ k
    if scale:
        scores = scores / (d_head ** 0.5)
    p = jax.nn.softmax(scores, axis=-1)
    attn = (p @ v).transpose(0, 2, 1, 3).reshape(bs, S, HD)
    out = attn @ params["w_out"] + params["b_out"][0]
    res = x + out
    mu = jnp.mean(res, axis=-1, keepdims=True)
    var = jnp.mean((res - mu) ** 2, axis=-1, keepdims=True)
    return (res - mu) / jnp.sqrt(var + 1e-5) * params["gamma"][0] + params["beta"][0]


def init_params(key, d_model, n_heads, d_head):
    """Deterministic init matching nn.Linear default (uniform +-1/sqrt(fan_in))."""
    HD = n_heads * d_head
    k1, k2, k3, k4 = jax.random.split(key, 4)
    lim_a = 1.0 / math.sqrt(d_model)
    lim_o = 1.0 / math.sqrt(HD)
    return {
        # weights stored transposed (in_features, out_features) for x @ W.
        "w_qkv": jax.random.uniform(k1, (d_model, 3 * HD), jnp.float32, -lim_a, lim_a),
        "b_qkv": jax.random.uniform(k2, (1, 3 * HD), jnp.float32, -lim_a, lim_a),
        "w_out": jax.random.uniform(k3, (HD, d_model), jnp.float32, -lim_o, lim_o),
        "b_out": jax.random.uniform(k4, (1, d_model), jnp.float32, -lim_o, lim_o),
        "gamma": jnp.ones((1, d_model), jnp.float32),
        "beta": jnp.zeros((1, d_model), jnp.float32),
    }


if __name__ == "__main__":
    bs, seq, d_model, n_heads = 2, 8, 32, 4
    d_head = d_model // n_heads

    key = jax.random.PRNGKey(0)
    kx, kp = jax.random.split(key)
    x = jax.random.normal(kx, (bs, seq, d_model), jnp.float32)
    params = init_params(kp, d_model, n_heads, d_head)

    out = multi_head_attention(x, params, n_heads=n_heads, d_head=d_head, scale=True)
    out = jax.block_until_ready(out)

    ref = reference(x, params, n_heads=n_heads, d_head=d_head, scale=True)
    # bf16 MXU operands + approx reciprocal => looser tolerance than pure f32.
    np.testing.assert_allclose(np.asarray(out), np.asarray(ref), rtol=5e-2, atol=5e-2)

    print("KERNEL_OK")
</pallas_src>

<mosaic_0001>
module attributes {stable_mosaic.version = 11 : i64} {
  func.func @mha_kernel(%arg0: i32, %arg1: memref<2x8x32xf32, #tpu.memory_space<vmem>>, %arg2: memref<32x96xbf16, #tpu.memory_space<vmem>>, %arg3: memref<1x96xf32, #tpu.memory_space<vmem>>, %arg4: memref<32x32xbf16, #tpu.memory_space<vmem>>, %arg5: memref<1x32xf32, #tpu.memory_space<vmem>>, %arg6: memref<1x32xf32, #tpu.memory_space<vmem>>, %arg7: memref<1x32xf32, #tpu.memory_space<vmem>>, %arg8: memref<2x8x32xf32, #tpu.memory_space<vmem>>, %arg9: memref<2x8x32xf32, #tpu.memory_space<vmem>>) attributes {dimension_semantics = [#tpu.dimension_semantics<parallel>], iteration_bounds = array<i64: 1>, scalar_prefetch = 0 : i64, scratch_operands = 1 : i64, tpu.core_type = #tpu.core_type<tc>, window_params = [{transform_indices = @transform_0, window_bounds = array<i64: 2, 8, 32>}, {pipeline_mode = #tpu.pipeline_mode<synchronous>, transform_indices = @transform_1, window_bounds = array<i64: 32, 96>}, {pipeline_mode = #tpu.pipeline_mode<synchronous>, transform_indices = @transform_2, window_bounds = array<i64: 1, 96>}, {pipeline_mode = #tpu.pipeline_mode<synchronous>, transform_indices = @transform_3, window_bounds = array<i64: 32, 32>}, {pipeline_mode = #tpu.pipeline_mode<synchronous>, transform_indices = @transform_4, window_bounds = array<i64: 1, 32>}, {pipeline_mode = #tpu.pipeline_mode<synchronous>, transform_indices = @transform_5, window_bounds = array<i64: 1, 32>}, {pipeline_mode = #tpu.pipeline_mode<synchronous>, transform_indices = @transform_6, window_bounds = array<i64: 1, 32>}, {transform_indices = @transform_7, window_bounds = array<i64: 2, 8, 32>}]} {
    %c0 = arith.constant 0 : index
    %c0_0 = arith.constant 0 : index
    %c0_1 = arith.constant 0 : index
    %0 = vector.load %arg1[%c0, %c0_0, %c0_1] : memref<2x8x32xf32, #tpu.memory_space<vmem>>, vector<2x8x32xf32>
    %1 = vector.shape_cast %0 : vector<2x8x32xf32> to vector<16x32xf32>
    %2 = arith.truncf %1 : vector<16x32xf32> to vector<16x32xbf16>
    %c0_2 = arith.constant 0 : index
    %c0_3 = arith.constant 0 : index
    %3 = vector.load %arg2[%c0_2, %c0_3] : memref<32x96xbf16, #tpu.memory_space<vmem>>, vector<32x96xbf16>
    %cst = arith.constant dense<0.000000e+00> : vector<16x96xf32>
    %4 = tpu.matmul %2, %3, %cst {dimension_numbers = #tpu.dot_dimension_numbers<[1], [0], [0], [1], [0, 0, 1, 1], [], []>} : vector<16x32xbf16>, vector<32x96xbf16>, vector<16x96xf32> -> vector<16x96xf32>
    %c0_4 = arith.constant 0 : index
    %c0_5 = arith.constant 0 : index
    %5 = vector.load %arg3[%c0_4, %c0_5] : memref<1x96xf32, #tpu.memory_space<vmem>>, vector<1x96xf32>
    %6 = vector.shape_cast %5 : vector<1x96xf32> to vector<96xf32>
    %7 = vector.shape_cast %6 : vector<96xf32> to vector<1x96xf32>
    %8 = vector.broadcast %7 : vector<1x96xf32> to vector<16x96xf32>
    %9 = arith.addf %4, %8 : vector<16x96xf32>
    %10 = vector.shape_cast %9 : vector<16x96xf32> to vector<2x8x96xf32>
    %11 = vector.extract_strided_slice %10 {offsets = [0, 0, 0], sizes = [2, 8, 8], strides = [1, 1, 1]} : vector<2x8x96xf32> to vector<2x8x8xf32>
    %cst_6 = arith.constant 0.353553385 : f32
    %12 = vector.broadcast %cst_6 : f32 to vector<2x8x8xf32>
    %13 = arith.mulf %11, %12 : vector<2x8x8xf32>
    %14 = arith.truncf %13 : vector<2x8x8xf32> to vector<2x8x8xbf16>
    %15 = vector.extract_strided_slice %10 {offsets = [0, 0, 32], sizes = [2, 8, 8], strides = [1, 1, 1]} : vector<2x8x96xf32> to vector<2x8x8xf32>
    %16 = arith.truncf %15 : vector<2x8x8xf32> to vector<2x8x8xbf16>
    %17 = vector.extract_strided_slice %10 {offsets = [0, 0, 64], sizes = [2, 8, 8], strides = [1, 1, 1]} : vector<2x8x96xf32> to vector<2x8x8xf32>
    %18 = arith.truncf %17 : vector<2x8x8xf32> to vector<2x8x8xbf16>
    "tpu.trace_start"() <{level = 10 : i32, message = "bqd,bkd->bqk"}> : () -> ()
    %cst_7 = arith.constant dense<0.000000e+00> : vector<2x8x8xf32>
    %19 = tpu.matmul %14, %16, %cst_7 {dimension_numbers = #tpu.dot_dimension_numbers<[2], [2], [1], [1], [0, 0, 0, 1, 1, 1], [0], [0]>} : vector<2x8x8xbf16>, vector<2x8x8xbf16>, vector<2x8x8xf32> -> vector<2x8x8xf32>
    "tpu.trace_stop"() : () -> ()
    %cst_8 = arith.constant dense<0xFF800000> : vector<2x8xf32>
    %20 = vector.multi_reduction <maximumf>, %19, %cst_8 [2] : vector<2x8x8xf32> to vector<2x8xf32>
    %21 = vector.shape_cast %20 : vector<2x8xf32> to vector<2x8x1xf32>
    %22 = vector.broadcast %21 : vector<2x8x1xf32> to vector<2x8x8xf32>
    %23 = arith.subf %19, %22 : vector<2x8x8xf32>
    %24 = math.exp %23 : vector<2x8x8xf32>
    %cst_9 = arith.constant dense<0.000000e+00> : vector<2x8xf32>
    %25 = vector.multi_reduction <add>, %24, %cst_9 [2] : vector<2x8x8xf32> to vector<2x8xf32>
    %26 = vector.shape_cast %25 : vector<2x8xf32> to vector<2x8x1xf32>
    %27 = arith.truncf %24 : vector<2x8x8xf32> to vector<2x8x8xbf16>
    "tpu.trace_start"() <{level = 10 : i32, message = "bqk,bkd->bqd"}> : () -> ()
    %cst_10 = arith.constant dense<0.000000e+00> : vector<2x8x8xf32>
    %28 = tpu.matmul %27, %18, %cst_10 {dimension_numbers = #tpu.dot_dimension_numbers<[2], [1], [1], [2], [0, 0, 0, 1, 1, 2], [0], [0]>} : vector<2x8x8xbf16>, vector<2x8x8xbf16>, vector<2x8x8xf32> -> vector<2x8x8xf32>
    "tpu.trace_stop"() : () -> ()
    %29 = tpu.reciprocal %26 {approx = true} : vector<2x8x1xf32> -> vector<2x8x1xf32>
    %30 = vector.broadcast %29 : vector<2x8x1xf32> to vector<2x8x8xf32>
    %31 = arith.mulf %28, %30 : vector<2x8x8xf32>
    %c0_11 = arith.constant 0 : index
    %c0_12 = arith.constant 0 : index
    %c0_13 = arith.constant 0 : index
    %32 = vector.load %arg9[%c0_11, %c0_12, %c0_13] : memref<2x8x32xf32, #tpu.memory_space<vmem>>, vector<2x8x8xf32>
    tpu.vector_store %arg9[%c0_11, %c0_12, %c0_13], %31 {strides = array<i32>} : memref<2x8x32xf32, #tpu.memory_space<vmem>>, vector<2x8x8xf32>,
    %33 = vector.extract_strided_slice %10 {offsets = [0, 0, 8], sizes = [2, 8, 8], strides = [1, 1, 1]} : vector<2x8x96xf32> to vector<2x8x8xf32>
    %cst_14 = arith.constant 0.353553385 : f32
    %34 = vector.broadcast %cst_14 : f32 to vector<2x8x8xf32>
    %35 = arith.mulf %33, %34 : vector<2x8x8xf32>
    %36 = arith.truncf %35 : vector<2x8x8xf32> to vector<2x8x8xbf16>
    %37 = vector.extract_strided_slice %10 {offsets = [0, 0, 40], sizes = [2, 8, 8], strides = [1, 1, 1]} : vector<2x8x96xf32> to vector<2x8x8xf32>
    %38 = arith.truncf %37 : vector<2x8x8xf32> to vector<2x8x8xbf16>
    %39 = vector.extract_strided_slice %10 {offsets = [0, 0, 72], sizes = [2, 8, 8], strides = [1, 1, 1]} : vector<2x8x96xf32> to vector<2x8x8xf32>
    %40 = arith.truncf %39 : vector<2x8x8xf32> to vector<2x8x8xbf16>
    "tpu.trace_start"() <{level = 10 : i32, message = "bqd,bkd->bqk"}> : () -> ()
    %cst_15 = arith.constant dense<0.000000e+00> : vector<2x8x8xf32>
    %41 = tpu.matmul %36, %38, %cst_15 {dimension_numbers = #tpu.dot_dimension_numbers<[2], [2], [1], [1], [0, 0, 0, 1, 1, 1], [0], [0]>} : vector<2x8x8xbf16>, vector<2x8x8xbf16>, vector<2x8x8xf32> -> vector<2x8x8xf32>
    "tpu.trace_stop"() : () -> ()
    %cst_16 = arith.constant dense<0xFF800000> : vector<2x8xf32>
    %42 = vector.multi_reduction <maximumf>, %41, %cst_16 [2] : vector<2x8x8xf32> to vector<2x8xf32>
    %43 = vector.shape_cast %42 : vector<2x8xf32> to vector<2x8x1xf32>
    %44 = vector.broadcast %43 : vector<2x8x1xf32> to vector<2x8x8xf32>
    %45 = arith.subf %41, %44 : vector<2x8x8xf32>
    %46 = math.exp %45 : vector<2x8x8xf32>
    %cst_17 = arith.constant dense<0.000000e+00> : vector<2x8xf32>
    %47 = vector.multi_reduction <add>, %46, %cst_17 [2] : vector<2x8x8xf32> to vector<2x8xf32>
    %48 = vector.shape_cast %47 : vector<2x8xf32> to vector<2x8x1xf32>
    %49 = arith.truncf %46 : vector<2x8x8xf32> to vector<2x8x8xbf16>
    "tpu.trace_start"() <{level = 10 : i32, message = "bqk,bkd->bqd"}> : () -> ()
    %cst_18 = arith.constant dense<0.000000e+00> : vector<2x8x8xf32>
    %50 = tpu.matmul %49, %40, %cst_18 {dimension_numbers = #tpu.dot_dimension_numbers<[2], [1], [1], [2], [0, 0, 0, 1, 1, 2], [0], [0]>} : vector<2x8x8xbf16>, vector<2x8x8xbf16>, vector<2x8x8xf32> -> vector<2x8x8xf32>
    "tpu.trace_stop"() : () -> ()
    %51 = tpu.reciprocal %48 {approx = true} : vector<2x8x1xf32> -> vector<2x8x1xf32>
    %52 = vector.broadcast %51 : vector<2x8x1xf32> to vector<2x8x8xf32>
    %53 = arith.mulf %50, %52 : vector<2x8x8xf32>
    %c0_19 = arith.constant 0 : index
    %c0_20 = arith.constant 0 : index
    %c8 = arith.constant 8 : index
    %54 = vector.load %arg9[%c0_19, %c0_20, %c8] : memref<2x8x32xf32, #tpu.memory_space<vmem>>, vector<2x8x8xf32>
    tpu.vector_store %arg9[%c0_19, %c0_20, %c8], %53 {strides = array<i32>} : memref<2x8x32xf32, #tpu.memory_space<vmem>>, vector<2x8x8xf32>,
    %55 = vector.extract_strided_slice %10 {offsets = [0, 0, 16], sizes = [2, 8, 8], strides = [1, 1, 1]} : vector<2x8x96xf32> to vector<2x8x8xf32>
    %cst_21 = arith.constant 0.353553385 : f32
    %56 = vector.broadcast %cst_21 : f32 to vector<2x8x8xf32>
    %57 = arith.mulf %55, %56 : vector<2x8x8xf32>
    %58 = arith.truncf %57 : vector<2x8x8xf32> to vector<2x8x8xbf16>
    %59 = vector.extract_strided_slice %10 {offsets = [0, 0, 48], sizes = [2, 8, 8], strides = [1, 1, 1]} : vector<2x8x96xf32> to vector<2x8x8xf32>
    %60 = arith.truncf %59 : vector<2x8x8xf32> to vector<2x8x8xbf16>
    %61 = vector.extract_strided_slice %10 {offsets = [0, 0, 80], sizes = [2, 8, 8], strides = [1, 1, 1]} : vector<2x8x96xf32> to vector<2x8x8xf32>
    %62 = arith.truncf %61 : vector<2x8x8xf32> to vector<2x8x8xbf16>
    "tpu.trace_start"() <{level = 10 : i32, message = "bqd,bkd->bqk"}> : () -> ()
    %cst_22 = arith.constant dense<0.000000e+00> : vector<2x8x8xf32>
    %63 = tpu.matmul %58, %60, %cst_22 {dimension_numbers = #tpu.dot_dimension_numbers<[2], [2], [1], [1], [0, 0, 0, 1, 1, 1], [0], [0]>} : vector<2x8x8xbf16>, vector<2x8x8xbf16>, vector<2x8x8xf32> -> vector<2x8x8xf32>
    "tpu.trace_stop"() : () -> ()
    %cst_23 = arith.constant dense<0xFF800000> : vector<2x8xf32>
    %64 = vector.multi_reduction <maximumf>, %63, %cst_23 [2] : vector<2x8x8xf32> to vector<2x8xf32>
    %65 = vector.shape_cast %64 : vector<2x8xf32> to vector<2x8x1xf32>
    %66 = vector.broadcast %65 : vector<2x8x1xf32> to vector<2x8x8xf32>
    %67 = arith.subf %63, %66 : vector<2x8x8xf32>
    %68 = math.exp %67 : vector<2x8x8xf32>
    %cst_24 = arith.constant dense<0.000000e+00> : vector<2x8xf32>
    %69 = vector.multi_reduction <add>, %68, %cst_24 [2] : vector<2x8x8xf32> to vector<2x8xf32>
    %70 = vector.shape_cast %69 : vector<2x8xf32> to vector<2x8x1xf32>
    %71 = arith.truncf %68 : vector<2x8x8xf32> to vector<2x8x8xbf16>
    "tpu.trace_start"() <{level = 10 : i32, message = "bqk,bkd->bqd"}> : () -> ()
    %cst_25 = arith.constant dense<0.000000e+00> : vector<2x8x8xf32>
    %72 = tpu.matmul %71, %62, %cst_25 {dimension_numbers = #tpu.dot_dimension_numbers<[2], [1], [1], [2], [0, 0, 0, 1, 1, 2], [0], [0]>} : vector<2x8x8xbf16>, vector<2x8x8xbf16>, vector<2x8x8xf32> -> vector<2x8x8xf32>
    "tpu.trace_stop"() : () -> ()
    %73 = tpu.reciprocal %70 {approx = true} : vector<2x8x1xf32> -> vector<2x8x1xf32>
    %74 = vector.broadcast %73 : vector<2x8x1xf32> to vector<2x8x8xf32>
    %75 = arith.mulf %72, %74 : vector<2x8x8xf32>
    %c0_26 = arith.constant 0 : index
    %c0_27 = arith.constant 0 : index
    %c16 = arith.constant 16 : index
    %76 = vector.load %arg9[%c0_26, %c0_27, %c16] : memref<2x8x32xf32, #tpu.memory_space<vmem>>, vector<2x8x8xf32>
    tpu.vector_store %arg9[%c0_26, %c0_27, %c16], %75 {strides = array<i32>} : memref<2x8x32xf32, #tpu.memory_space<vmem>>, vector<2x8x8xf32>,
    %77 = vector.extract_strided_slice %10 {offsets = [0, 0, 24], sizes = [2, 8, 8], strides = [1, 1, 1]} : vector<2x8x96xf32> to vector<2x8x8xf32>
    %cst_28 = arith.constant 0.353553385 : f32
    %78 = vector.broadcast %cst_28 : f32 to vector<2x8x8xf32>
    %79 = arith.mulf %77, %78 : vector<2x8x8xf32>
    %80 = arith.truncf %79 : vector<2x8x8xf32> to vector<2x8x8xbf16>
    %81 = vector.extract_strided_slice %10 {offsets = [0, 0, 56], sizes = [2, 8, 8], strides = [1, 1, 1]} : vector<2x8x96xf32> to vector<2x8x8xf32>
    %82 = arith.truncf %81 : vector<2x8x8xf32> to vector<2x8x8xbf16>
    %83 = vector.extract_strided_slice %10 {offsets = [0, 0, 88], sizes = [2, 8, 8], strides = [1, 1, 1]} : vector<2x8x96xf32> to vector<2x8x8xf32>
    %84 = arith.truncf %83 : vector<2x8x8xf32> to vector<2x8x8xbf16>
    "tpu.trace_start"() <{level = 10 : i32, message = "bqd,bkd->bqk"}> : () -> ()
    %cst_29 = arith.constant dense<0.000000e+00> : vector<2x8x8xf32>
    %85 = tpu.matmul %80, %82, %cst_29 {dimension_numbers = #tpu.dot_dimension_numbers<[2], [2], [1], [1], [0, 0, 0, 1, 1, 1], [0], [0]>} : vector<2x8x8xbf16>, vector<2x8x8xbf16>, vector<2x8x8xf32> -> vector<2x8x8xf32>
    "tpu.trace_stop"() : () -> ()
    %cst_30 = arith.constant dense<0xFF800000> : vector<2x8xf32>
    %86 = vector.multi_reduction <maximumf>, %85, %cst_30 [2] : vector<2x8x8xf32> to vector<2x8xf32>
    %87 = vector.shape_cast %86 : vector<2x8xf32> to vector<2x8x1xf32>
    %88 = vector.broadcast %87 : vector<2x8x1xf32> to vector<2x8x8xf32>
    %89 = arith.subf %85, %88 : vector<2x8x8xf32>
    %90 = math.exp %89 : vector<2x8x8xf32>
    %cst_31 = arith.constant dense<0.000000e+00> : vector<2x8xf32>
    %91 = vector.multi_reduction <add>, %90, %cst_31 [2] : vector<2x8x8xf32> to vector<2x8xf32>
    %92 = vector.shape_cast %91 : vector<2x8xf32> to vector<2x8x1xf32>
    %93 = arith.truncf %90 : vector<2x8x8xf32> to vector<2x8x8xbf16>
    "tpu.trace_start"() <{level = 10 : i32, message = "bqk,bkd->bqd"}> : () -> ()
    %cst_32 = arith.constant dense<0.000000e+00> : vector<2x8x8xf32>
    %94 = tpu.matmul %93, %84, %cst_32 {dimension_numbers = #tpu.dot_dimension_numbers<[2], [1], [1], [2], [0, 0, 0, 1, 1, 2], [0], [0]>} : vector<2x8x8xbf16>, vector<2x8x8xbf16>, vector<2x8x8xf32> -> vector<2x8x8xf32>
    "tpu.trace_stop"() : () -> ()
    %95 = tpu.reciprocal %92 {approx = true} : vector<2x8x1xf32> -> vector<2x8x1xf32>
    %96 = vector.broadcast %95 : vector<2x8x1xf32> to vector<2x8x8xf32>
    %97 = arith.mulf %94, %96 : vector<2x8x8xf32>
    %c0_33 = arith.constant 0 : index
    %c0_34 = arith.constant 0 : index
    %c24 = arith.constant 24 : index
    %98 = vector.load %arg9[%c0_33, %c0_34, %c24] : memref<2x8x32xf32, #tpu.memory_space<vmem>>, vector<2x8x8xf32>
    tpu.vector_store %arg9[%c0_33, %c0_34, %c24], %97 {strides = array<i32>} : memref<2x8x32xf32, #tpu.memory_space<vmem>>, vector<2x8x8xf32>,
    %c0_35 = arith.constant 0 : index
    %c0_36 = arith.constant 0 : index
    %c0_37 = arith.constant 0 : index
    %99 = vector.load %arg9[%c0_35, %c0_36, %c0_37] : memref<2x8x32xf32, #tpu.memory_space<vmem>>, vector<2x8x32xf32>
    %100 = vector.shape_cast %99 : vector<2x8x32xf32> to vector<16x32xf32>
    %101 = arith.truncf %100 : vector<16x32xf32> to vector<16x32xbf16>
    %c0_38 = arith.constant 0 : index
    %c0_39 = arith.constant 0 : index
    %102 = vector.load %arg4[%c0_38, %c0_39] : memref<32x32xbf16, #tpu.memory_space<vmem>>, vector<32x32xbf16>
    %cst_40 = arith.constant dense<0.000000e+00> : vector<16x32xf32>
    %103 = tpu.matmul %101, %102, %cst_40 {dimension_numbers = #tpu.dot_dimension_numbers<[1], [0], [0], [1], [0, 0, 1, 1], [], []>} : vector<16x32xbf16>, vector<32x32xbf16>, vector<16x32xf32> -> vector<16x32xf32>
    %c0_41 = arith.constant 0 : index
    %c0_42 = arith.constant 0 : index
    %104 = vector.load %arg5[%c0_41, %c0_42] : memref<1x32xf32, #tpu.memory_space<vmem>>, vector<1x32xf32>
    %105 = vector.shape_cast %104 : vector<1x32xf32> to vector<32xf32>
    %106 = vector.shape_cast %105 : vector<32xf32> to vector<1x32xf32>
    %107 = vector.broadcast %106 : vector<1x32xf32> to vector<16x32xf32>
    %108 = arith.addf %103, %107 : vector<16x32xf32>
    %109 = arith.addf %1, %108 : vector<16x32xf32>
    %cst_43 = arith.constant dense<0.000000e+00> : vector<16xf32>
    %110 = vector.multi_reduction <add>, %109, %cst_43 [1] : vector<16x32xf32> to vector<16xf32>
    %111 = vector.shape_cast %110 : vector<16xf32> to vector<16x1xf32>
    %cst_44 = arith.constant 3.200000e+01 : f32
    %112 = vector.broadcast %cst_44 : f32 to vector<16x1xf32>
    %113 = arith.divf %111, %112 : vector<16x1xf32>
    %114 = arith.mulf %109, %109 : vector<16x32xf32>
    %cst_45 = arith.constant dense<0.000000e+00> : vector<16xf32>
    %115 = vector.multi_reduction <add>, %114, %cst_45 [1] : vector<16x32xf32> to vector<16xf32>
    %116 = vector.shape_cast %115 : vector<16xf32> to vector<16x1xf32>
    %cst_46 = arith.constant 3.200000e+01 : f32
    %117 = vector.broadcast %cst_46 : f32 to vector<16x1xf32>
    %118 = arith.divf %116, %117 : vector<16x1xf32>
    %119 = arith.mulf %113, %113 : vector<16x1xf32>
    %120 = arith.subf %118, %119 : vector<16x1xf32>
    %121 = vector.broadcast %113 : vector<16x1xf32> to vector<16x32xf32>
    %122 = arith.subf %109, %121 : vector<16x32xf32>
    %cst_47 = arith.constant 9.99999974E-6 : f32
    %123 = vector.broadcast %cst_47 : f32 to vector<16x1xf32>
    %124 = arith.addf %120, %123 : vector<16x1xf32>
    %125 = math.rsqrt %124 : vector<16x1xf32>
    %126 = vector.broadcast %125 : vector<16x1xf32> to vector<16x32xf32>
    %127 = arith.mulf %122, %126 : vector<16x32xf32>
    %c0_48 = arith.constant 0 : index
    %c0_49 = arith.constant 0 : index
    %128 = vector.load %arg6[%c0_48, %c0_49] : memref<1x32xf32, #tpu.memory_space<vmem>>, vector<1x32xf32>
    %129 = vector.shape_cast %128 : vector<1x32xf32> to vector<32xf32>
    %130 = vector.shape_cast %129 : vector<32xf32> to vector<1x32xf32>
    %131 = vector.broadcast %130 : vector<1x32xf32> to vector<16x32xf32>
    %132 = arith.mulf %127, %131 : vector<16x32xf32>
    %c0_50 = arith.constant 0 : index
    %c0_51 = arith.constant 0 : index
    %133 = vector.load %arg7[%c0_50, %c0_51] : memref<1x32xf32, #tpu.memory_space<vmem>>, vector<1x32xf32>
    %134 = vector.shape_cast %133 : vector<1x32xf32> to vector<32xf32>
    %135 = vector.shape_cast %134 : vector<32xf32> to vector<1x32xf32>
    %136 = vector.broadcast %135 : vector<1x32xf32> to vector<16x32xf32>
    %137 = arith.addf %132, %136 : vector<16x32xf32>
    %138 = vector.shape_cast %137 : vector<16x32xf32> to vector<2x8x32xf32>
    %c0_52 = arith.constant 0 : index
    %c0_53 = arith.constant 0 : index
    %c0_54 = arith.constant 0 : index
    %139 = vector.load %arg8[%c0_52, %c0_53, %c0_54] : memref<2x8x32xf32, #tpu.memory_space<vmem>>, vector<2x8x32xf32>
    tpu.vector_store %arg8[%c0_52, %c0_53, %c0_54], %138 {strides = array<i32>} : memref<2x8x32xf32, #tpu.memory_space<vmem>>, vector<2x8x32xf32>,
    return
  }
  func.func @transform_0(%arg0: i32) -> (i32, i32, i32) {
    %c0_i32 = arith.constant 0 : i32
    %c0_i32_0 = arith.constant 0 : i32
    %c0_i32_1 = arith.constant 0 : i32
    return %arg0, %c0_i32, %c0_i32_0 : i32, i32, i32
  }
  func.func @transform_1(%arg0: i32) -> (i32, i32) {
    %c0_i32 = arith.constant 0 : i32
    %c0_i32_0 = arith.constant 0 : i32
    %c0_i32_1 = arith.constant 0 : i32
    return %c0_i32, %c0_i32_0 : i32, i32
  }
  func.func @transform_2(%arg0: i32) -> (i32, i32) {
    %c0_i32 = arith.constant 0 : i32
    %c0_i32_0 = arith.constant 0 : i32
    %c0_i32_1 = arith.constant 0 : i32
    return %c0_i32, %c0_i32_0 : i32, i32
  }
  func.func @transform_3(%arg0: i32) -> (i32, i32) {
    %c0_i32 = arith.constant 0 : i32
    %c0_i32_0 = arith.constant 0 : i32
    %c0_i32_1 = arith.constant 0 : i32
    return %c0_i32, %c0_i32_0 : i32, i32
  }
  func.func @transform_4(%arg0: i32) -> (i32, i32) {
    %c0_i32 = arith.constant 0 : i32
    %c0_i32_0 = arith.constant 0 : i32
    %c0_i32_1 = arith.constant 0 : i32
    return %c0_i32, %c0_i32_0 : i32, i32
  }
  func.func @transform_5(%arg0: i32) -> (i32, i32) {
    %c0_i32 = arith.constant 0 : i32
    %c0_i32_0 = arith.constant 0 : i32
    %c0_i32_1 = arith.constant 0 : i32
    return %c0_i32, %c0_i32_0 : i32, i32
  }
  func.func @transform_6(%arg0: i32) -> (i32, i32) {
    %c0_i32 = arith.constant 0 : i32
    %c0_i32_0 = arith.constant 0 : i32
    %c0_i32_1 = arith.constant 0 : i32
    return %c0_i32, %c0_i32_0 : i32, i32
  }
  func.func @transform_7(%arg0: i32) -> (i32, i32, i32) {
    %c0_i32 = arith.constant 0 : i32
    %c0_i32_0 = arith.constant 0 : i32
    %c0_i32_1 = arith.constant 0 : i32
    return %arg0, %c0_i32, %c0_i32_0 : i32, i32, i32
  }
}

</mosaic_0001>

<bundles_post_ra>
// kernel: tpu_custom_call.1
= control target key start
LH: loop header
LB: loop body
LE: loop exit
PB: predicated region body
PF: predicated region fallthrough
CT: control target
= control target key end

     0   :  { %12 = vsyncpa [#allocation4], 0  ;;  %s1868_s0 = inlined_call_operand.hbm [shape: f32[2,8,32], index: 0, kind: input, shape index: {}]   ;;  %s1869_s1 = inlined_call_operand.hbm [shape: bf16[32,96], index: 1, kind: input, shape index: {}]   ;;  %s1870_s2 = inlined_call_operand.vmem [shape: f32[1,96], index: 2, kind: input, shape index: {}]   ;;  %s1871_s3 = inlined_call_operand.hbm [shape: bf16[32,32], index: 3, kind: input, shape index: {}]   ;;  %s1872_s4 = inlined_call_operand.vmem [shape: f32[1,32], index: 4, kind: input, shape index: {}]   ;;  %s1873_s5 = inlined_call_operand.vmem [shape: f32[1,32], index: 5, kind: input, shape index: {}]   ;;  %s1874_s6 = inlined_call_operand.vmem [shape: f32[1,32], index: 6, kind: input, shape index: {}]   ;;  %s1875_s7 = inlined_call_operand.hbm [shape: f32[2,8,32], index: 7, kind: output, shape index: {}]  }
   0x1   :  { %13 = vsyncpa [#allocation7], 0 }
   0x2   :  { %14 = vsyncpa [#allocation5], 0  ;;  %s1536_s24 = smov [#allocation6]   ;;  %s1442_s28 = scalar_lea.hbm %s1869_s1, 256 }
   0x3   :  { %s32_s25 = sshll.u32 %s1536_s24, 4  ;;  %p1443_p0 = scmp.ne.s32.totalorder %s1869_s1, %s1442_s28  ;;  %s33_s25 = int_to_ptr.vmem [resolvable:$true] %s32_s25 }
   0x4   :  { %p1446_p1 = scmp.lt.u32.totalorder %s1442_s28, %s1869_s1 }
   0x6   :  { %p1448_p2 = pnand %p1446_p1, %p1443_p0 }
   0x8   :  { %1451 = shalt.err (!%p1448_p2)
}
   0x9   :  { %s1452_s10 = scalar_lea.vmem %s33_s25, 256  ;;  %p1457_p4 = scmp.lt.s32.totalorder %s33_s25, %s33_s25 }
   0xa   :  { %p1453_p3 = scmp.ne.s32.totalorder %s33_s25, %s1452_s10  ;;  %p1458_p5 = scmp.lt.s32.totalorder %s1452_s10, %s1452_s10 }
   0xc   :  { %p1459_p6 = por %p1458_p5, %p1457_p4 }
   0xe   :  { %p1460_p7 = pnand %p1459_p6, %p1453_p3 }
  0x10   :  { %1463 = shalt.err (!%p1460_p7)
}
  0x11   :  { %s1537_s11 = smov 64   ;;  %s1538_s12 = smov 4  }
  0x12   :  { %38 = dma.hbm_to_vmem [thread:$0]  %s1869_s1, 256, %s33_s25, [#allocation7], %s1537_s11, %s1537_s11, %s1538_s12  }
  0x13   :  { %s1539_s15 = smov [#allocation3]   ;;  %s1464_s19 = scalar_lea.hbm %s1868_s0, 256 }
  0x14   :  { %s20_s16 = sshll.u32 %s1539_s15, 4  ;;  %p1465_p8 = scmp.ne.s32.totalorder %s1868_s0, %s1464_s19  ;;  %s21_s16 = int_to_ptr.vmem [resolvable:$true] %s20_s16 }
  0x15   :  { %p1468_p9 = scmp.lt.u32.totalorder %s1464_s19, %s1868_s0 }
  0x17   :  { %p1470_p10 = pnand %p1468_p9, %p1465_p8 }
  0x19   :  { %1473 = shalt.err (!%p1470_p10)
}
  0x1a   :  { %s1474_s24 = scalar_lea.vmem %s21_s16, 256  ;;  %p1479_p12 = scmp.lt.s32.totalorder %s21_s16, %s21_s16 }
  0x1b   :  { %p1475_p11 = scmp.ne.s32.totalorder %s21_s16, %s1474_s24  ;;  %p1480_p13 = scmp.lt.s32.totalorder %s1474_s24, %s1474_s24 }
  0x1d   :  { %p1481_p0 = por %p1480_p13, %p1479_p12 }
  0x1f   :  { %p1482_p1 = pnand %p1481_p0, %p1475_p11 }
  0x21   :  { %1485 = shalt.err (!%p1482_p1)
}
  0x22   :  { %s1540_s1 = smov 128   ;;  %s1541_s25 = smov 8  }
  0x23   :  { %26 = dma.hbm_to_vmem [thread:$0]  %s1868_s0, 256, %s21_s16, [#allocation4], %s1540_s1, %s1540_s1, %s1541_s25  }
  0x24   :  { %s1542_s28 = smov [#allocation8]   ;;  %s1486_s9 = scalar_lea.hbm %s1871_s3, 256 }
  0x25   :  { %s46_s29 = sshll.u32 %s1542_s28, 4  ;;  %p1487_p2 = scmp.ne.s32.totalorder %s1871_s3, %s1486_s9  ;;  %s47_s29 = int_to_ptr.vmem [resolvable:$true] %s46_s29 }
  0x26   :  { %p1490_p3 = scmp.lt.u32.totalorder %s1486_s9, %s1871_s3 }
  0x28   :  { %p1492_p4 = pnand %p1490_p3, %p1487_p2 }
  0x2a   :  { %1495 = shalt.err (!%p1492_p4)
}
  0x2b   :  { %s1496_s17 = scalar_lea.vmem %s47_s29, 256  ;;  %p1501_p6 = scmp.lt.s32.totalorder %s47_s29, %s47_s29 }
  0x2c   :  { %p1497_p5 = scmp.ne.s32.totalorder %s47_s29, %s1496_s17  ;;  %p1502_p7 = scmp.lt.s32.totalorder %s1496_s17, %s1496_s17 }
  0x2e   :  { %p1503_p8 = por %p1502_p7, %p1501_p6 }
  0x30   :  { %p1504_p9 = pnand %p1503_p8, %p1497_p5 }
  0x32   :  { %1507 = shalt.err (!%p1504_p9)
}
  0x33   :  { %52 = dma.hbm_to_vmem [thread:$0]  %s1871_s3, 256, %s47_s29, [#allocation7], %s1537_s11, %s1537_s11, %s1538_s12  }
  0x34   :  { %1530 = dma.done.wait [#allocation4], 256  }
  0x35   :  { %1531 = vsyncadd [#allocation4], 4294967040 }
  0x36   :  { %1532 = dma.done.wait [#allocation7], 512  }
  0x37   :  { %1533 = vsyncadd [#allocation7], 4294966784  ;;  %v1543_v0 = vmov 0.0   ;;  %vm1544_vm0 = vmmov 0   ;;  %v1402_v1 = vld [vmem:[#allocation6] sm:$0xff]   ;;  %v1403_v2 = vld [vmem:[#allocation6 + $0x8] sm:$0xff]  }
  0x38   :  { %1268 = vmatprep.subr.bf16.mxu0 %v1543_v0  ;;  %1272 = vmatprep.mubr.msk.bf16.mxu0 %vm1544_vm0, %v1543_v0  ;;  %v1649_v3 = vld [vmem:[#allocation3] sm:$0xff]  ;;  %v1651_v4 = vld [vmem:[#allocation3 + $0x8] sm:$0xff]  ;;  %vm95_vm1 = vcmask 261120   ;;  %v1204_v6 = vld [vmem:[%s1870_s2] ss:$0 sm:$0xff]  ;;  %s1545_s18 = smov 96  }
  0x39   :  { %1276 = vmatprep.subr.bf16.mxu1 %v1543_v0  ;;  %1278 = vmatprep.mubr.msk.bf16.mxu1 %vm1544_vm0, %v1543_v0  ;;  %v71_v5 = vpack.c.bf16 %v1651_v4, %v1649_v3  ;;  %s1546_s19 = smov 88   ;;  %s1547_s2 = smov 120   ;;  %vm149_vm2 = vcmask 64512   ;;  %vm270_vm3 = vcmask 1043456   ;;  %vm598_vm4 = vcmask 130112  }
  0x3a   :  { %1269 = vmatpush3.bf16.msra.mxu0 %v1402_v1  ;;  %s1548_s20 = smov 56   ;;  %s1550_s21 = smov 112   ;;  %vm829_vm5 = vcmask 195712   ;;  %vm1060_vm6 = vcmask 261312  }
  0x3b   :  { %1270 = vmatprep.subr.bf16.mxu0 %v1543_v0  ;;  %s1551_s22 = smov 48   ;;  %s1552_s23 = smov 72  }
  0x3c   :  { %s1553_s24 = smov 104   ;;  %s1554_s26 = smov 40  }
  0x3d   :  { %s1555_s27 = smov 16   ;;  %s1556_s28 = smov 24  }
  0x3e   :  { %1271 = vmatpush3.bf16.msra.mxu0 %v1403_v2  ;;  %s1557_s13 = smov [#allocation9]  }
  0x3f   :  { %1282 = vmatprep.subr.bf16.mxu0 %v1543_v0  ;;  %s1191_s14 = sshll.u32 %s1557_s13, 4  ;;  %s1192_s14 = int_to_ptr.vmem [resolvable:$true] %s1191_s14 }
  0x40   :  { %p1513_p11 = scmp.lt.s32.totalorder %s1192_s14, %s1192_s14 }
  0x41   :  { %1273 = vmatmul.mubr.msk.bf16.vlgmr.msra.gmra.mrb[0].mxu0 %vm95_vm1, %v71_v5 }
  0x42   :  { %1284 = vmatprep.mubr.msk.bf16.mxu0 %vm1544_vm0, %v1543_v0 }
 0x114   :  { %v133_v7 = vpop.f32.mrb[0].mxu0 }
 0x115   :  { %v134_v8 = vadd.f32 %v1204_v6, %v133_v7  ;;  %v1274_v9 = vpop.f32.mrb[1].mxu0 }
 0x116   :  { %v136_v10 = vpop.f32.mrb[2].mxu0 }
 0x117   :  { %v1663_v11 = vpack.c.bf16 %v134_v8, %v134_v8  ;;  %v137_v12 = vadd.f32 %v1204_v6, %v136_v10  ;;  %v1275_v13 = vpop.f32.mrb[3].mxu0  ;;  %v140_v15 = vmul.f32 0.35355338, %v134_v8 }
 0x119   :  { %147 = vrot.lane.b32.xlu0 %v1663_v11, %s1545_s18  ;;  %v1666_v14 = vpack.c.bf16 %v137_v12, %v137_v12  ;;  %v1673_v16 = vpack.c.bf16 %v140_v15, %v140_v15  ;;  %v141_v17 = vmul.f32 0.35355338, %v137_v12 }
 0x11b   :  { %v1676_v18 = vpack.c.bf16 %v141_v17, %v141_v17 }
 0x11d   :  { %197 = vrot.lane.b32.xlu0 %v1666_v14, %s1545_s18 }
 0x121   :  { %265 = vrot.lane.b32.xlu0 %v1663_v11, %s1537_s11 }
 0x125   :  { %371 = vrot.lane.b32.xlu0 %v1663_v11, %s1546_s19 }
 0x129   :  { %422 = vrot.lane.b32.xlu0 %v1666_v14, %s1546_s19 }
 0x12d   :  { %369 = vrot.lane.b32.xlu0 %v1673_v16, %s1547_s2 }
 0x131   :  { %420 = vrot.lane.b32.xlu0 %v1676_v18, %s1547_s2 }
 0x135   :  { %490 = vrot.lane.b32.xlu0 %v1663_v11, %s1548_s20 }
 0x18b   :  { %v148_v19 = vpop.permute.xlu0 %147 }
 0x18c   :  { %v154_v20 = vsel %vm149_vm2, %v148_v19, 0 }
 0x18d   :  { %1277 = vmatpush3.bf16.xpose.msra.mxu1 %v154_v20 }
 0x18e   :  { %1288 = vmatprep.subr.bf16.mxu1 %v1543_v0 }
 0x18f   :  { %v198_v21 = vpop.permute.xlu0 %197 }
 0x190   :  { %v203_v22 = vsel %vm149_vm2, %v198_v21, 0 }
 0x191   :  { %1283 = vmatpush3.bf16.xpose.msra.mxu0 %v203_v22 }
 0x192   :  { %1294 = vmatprep.subr.bf16.mxu0 %v1543_v0 }
 0x193   :  { %v266_v23 = vpop.permute.xlu0 %265 }
 0x194   :  { %v272_v24 = vsel %vm270_vm3, %v266_v23, 0  ;;  %1279 = vmatmul.mubr.msk.bf16.vlgmr.msra.gmra.mrb[0].mxu1 %vm149_vm2, %v1673_v16 }
 0x195   :  { %1289 = vmatpush3.bf16.msra.mxu1 %v272_v24  ;;  %1290 = vmatprep.mubr.msk.bf16.mxu1 %vm1544_vm0, %v1543_v0 }
 0x196   :  { %1300 = vmatprep.subr.bf16.mxu1 %v1543_v0 }
 0x197   :  { %v372_v35 = vpop.permute.xlu0 %371 }
 0x198   :  { %1285 = vmatmul.mubr.msk.bf16.vlgmr.msra.gmra.mrb[4].mxu0 %vm149_vm2, %v1676_v18  ;;  %v377_v49 = vsel %vm149_vm2, %v372_v35, 0 }
 0x199   :  { %1296 = vmatprep.mubr.msk.bf16.mxu0 %vm1544_vm0, %v1543_v0 }
 0x19b   :  { %v423_v40 = vpop.permute.xlu0 %422 }
 0x19c   :  { %v428_v52 = vsel %vm149_vm2, %v423_v40, 0 }
 0x19f   :  { %v370_v45 = vpop.permute.xlu0 %369 }
 0x1a3   :  { %v421_v48 = vpop.permute.xlu0 %420 }
 0x1a7   :  { %v491_v53 = vpop.permute.xlu0 %490 }
 0x1a8   :  { %v496_v54 = vsel %vm270_vm3, %v491_v53, 0 }
 0x267   :  { %v190_v25 = vpop.f32.mrb[0].mxu1 }
 0x268   :  { %v1280_v26 = vpop.f32.mrb[1].mxu1  ;;  %v245_v27 = vsel %vm149_vm2, %v190_v25, -inf }
 0x269   :  { %246 = vmax.xlane.f32.xlu1 %v245_v27  ;;  %v193_v28 = vpop.f32.mrb[2].mxu1 }
 0x26a   :  { %v1281_v29 = vpop.f32.mrb[3].mxu1 }
 0x26b   :  { %v239_v30 = vpop.f32.mrb[4].mxu0 }
 0x26c   :  { %v1286_v31 = vpop.f32.mrb[5].mxu0  ;;  %v248_v32 = vsel %vm149_vm2, %v239_v30, -inf }
 0x26d   :  { %249 = vmax.xlane.f32.xlu1 %v248_v32  ;;  %v242_v33 = vpop.f32.mrb[6].mxu0 }
 0x26e   :  { %v1287_v34 = vpop.f32.mrb[7].mxu0 }
 0x27e   :  { %314 = vrot.lane.b32.xlu1 %v1666_v14, %s1537_s11  ;;  %s1549_s11 = smov 80  }
 0x282   :  { %538 = vrot.lane.b32.xlu1 %v1666_v14, %s1548_s20 }
 0x2f6   :  { %v247_v36 = vpop.xlane.xlu1 %246 }
 0x2f7   :  { %v251_v37 = vsub.f32 %v190_v25, %v247_v36 }
 0x2f9   :  { %v253_v38 = vmul.f32 1.442695, %v251_v37 }
 0x2fa   :  { %v250_v39 = vpop.xlane.xlu1 %249 }
 0x2fb   :  { %1406 = vpow2.f32 %v253_v38  ;;  %v252_v41 = vsub.f32 %v239_v30, %v250_v39 }
 0x2fd   :  { %v255_v42 = vmul.f32 1.442695, %v252_v41 }
 0x2fe   :  { %v315_v43 = vpop.permute.xlu1 %314 }
 0x2ff   :  { %1408 = vpow2.f32 %v255_v42  ;;  %v320_v44 = vsel %vm270_vm3, %v315_v43, 0 }
 0x300   :  { %1295 = vmatpush3.bf16.msra.mxu0 %v320_v44 }
 0x301   :  { %1306 = vmatprep.subr.bf16.mxu0 %v1543_v0 }
 0x302   :  { %v539_v55 = vpop.permute.xlu1 %538 }
 0x303   :  { %v544_v56 = vsel %vm270_vm3, %v539_v55, 0 }
 0x305   :  { %v1703_v46 = vpop.eup %1406 }
 0x306   :  { %v263_v47 = vpack.c.bf16 %v1703_v46, %v1703_v46 }
 0x308   :  { %1291 = vmatmul.mubr.msk.bf16.vlgmr.msra.gmra.mrb[4].mxu1 %vm149_vm2, %v263_v47 }
 0x309   :  { %v1709_v50 = vpop.eup %1408  ;;  %1301 = vmatpush3.bf16.xpose.msra.mxu1 %v377_v49  ;;  %1302 = vmatprep.mubr.msk.bf16.mxu1 %vm1544_vm0, %v1543_v0 }
 0x30a   :  { %v264_v51 = vpack.c.bf16 %v1709_v50, %v1709_v50  ;;  %1312 = vmatprep.subr.bf16.mxu1 %v1543_v0 }
 0x30c   :  { %1297 = vmatmul.mubr.msk.bf16.vlgmr.msra.gmra.mrb[8].mxu0 %vm149_vm2, %v264_v51 }
 0x30d   :  { %1307 = vmatpush3.bf16.xpose.msra.mxu0 %v428_v52  ;;  %1308 = vmatprep.mubr.msk.bf16.mxu0 %vm1544_vm0, %v1543_v0 }
 0x30e   :  { %1318 = vmatprep.subr.bf16.mxu0 %v1543_v0 }
 0x310   :  { %1303 = vmatmul.mubr.msk.bf16.vlgmr.msra.gmra.mrb[8].mxu1 %vm149_vm2, %v370_v45 }
 0x311   :  { %1313 = vmatpush3.bf16.msra.mxu1 %v496_v54  ;;  %1314 = vmatprep.mubr.msk.bf16.mxu1 %vm1544_vm0, %v1543_v0 }
 0x312   :  { %1324 = vmatprep.subr.bf16.mxu1 %v1543_v0 }
 0x314   :  { %1309 = vmatmul.mubr.msk.bf16.vlgmr.msra.gmra.mrb[12].mxu0 %vm149_vm2, %v421_v48 }
 0x315   :  { %1319 = vmatpush3.bf16.msra.mxu0 %v544_v56  ;;  %1320 = vmatprep.mubr.msk.bf16.mxu0 %vm1544_vm0, %v1543_v0 }
 0x316   :  { %1330 = vmatprep.subr.bf16.mxu0 %v1543_v0 }
 0x3db   :  { %v1731_v57 = vpop.f32.mrb[4].mxu1 }
 0x3dc   :  { %v1292_v58 = vpop.f32.mrb[5].mxu1 }
 0x3dd   :  { %v311_v59 = vpop.f32.mrb[6].mxu1 }
 0x3de   :  { %v1293_v60 = vpop.f32.mrb[7].mxu1 }
 0x3df   :  { %v1733_v61 = vpop.f32.mrb[8].mxu0 }
 0x3e0   :  { %v1298_v62 = vpop.f32.mrb[9].mxu0 }
 0x3e1   :  { %v359_v63 = vpop.f32.mrb[10].mxu0 }
 0x3e2   :  { %v1299_v1 = vpop.f32.mrb[11].mxu0 }
 0x3e3   :  { %v413_v2 = vpop.f32.mrb[8].mxu1 }
 0x3e4   :  { %v1304_v5 = vpop.f32.mrb[9].mxu1  ;;  %v470_v6 = vsel %vm149_vm2, %v413_v2, -inf }
 0x3e5   :  { %v416_v7 = vpop.f32.mrb[10].mxu1  ;;  %471 = vmax.xlane.f32.xlu1 %v470_v6 }
 0x3e6   :  { %v1305_v8 = vpop.f32.mrb[11].mxu1 }
 0x3e7   :  { %v464_v9 = vpop.f32.mrb[12].mxu0 }
 0x3e8   :  { %v1310_v10 = vpop.f32.mrb[13].mxu0  ;;  %v473_v12 = vsel %vm149_vm2, %v464_v9, -inf }
 0x3e9   :  { %474 = vmax.xlane.f32.xlu0 %v473_v12  ;;  %v467_v13 = vpop.f32.mrb[14].mxu0 }
 0x3ea   :  { %v1311_v15 = vpop.f32.mrb[15].mxu0 }
 0x3f6   :  { %603 = vrot.lane.b32.xlu1 %v1663_v11, %s1549_s11 }
 0x3fa   :  { %601 = vrot.lane.b32.xlu1 %v1673_v16, %s1550_s21 }
 0x3fe   :  { %769 = vrot.lane.b32.xlu1 %v1666_v14, %s1551_s22 }
 0x3ff   :  { %653 = vrot.lane.b32.xlu0 %v1666_v14, %s1549_s11 }
 0x403   :  { %651 = vrot.lane.b32.xlu0 %v1676_v18, %s1550_s21 }
 0x407   :  { %721 = vrot.lane.b32.xlu0 %v1663_v11, %s1551_s22 }
 0x472   :  { %v472_v17 = vpop.xlane.xlu1 %471 }
 0x473   :  { %v476_v19 = vsub.f32 %v413_v2, %v472_v17 }
 0x475   :  { %v478_v20 = vmul.f32 1.442695, %v476_v19 }
 0x476   :  { %v475_v21 = vpop.xlane.xlu0 %474  ;;  %v604_v26 = vpop.permute.xlu1 %603 }
 0x477   :  { %1410 = vpow2.f32 %v478_v20  ;;  %v477_v22 = vsub.f32 %v464_v9, %v475_v21  ;;  %v609_v29 = vsel %vm149_vm2, %v604_v26, 0 }
 0x479   :  { %v480_v23 = vmul.f32 1.442695, %v477_v22 }
 0x47a   :  { %v654_v24 = vpop.permute.xlu0 %653  ;;  %v602_v32 = vpop.permute.xlu1 %601 }
 0x47b   :  { %1412 = vpow2.f32 %v480_v23  ;;  %v659_v33 = vsel %vm149_vm2, %v654_v24, 0 }
 0x47e   :  { %v652_v28 = vpop.permute.xlu0 %651  ;;  %v770_v36 = vpop.permute.xlu1 %769 }
 0x47f   :  { %v775_v37 = vsel %vm270_vm3, %v770_v36, 0 }
 0x481   :  { %v1743_v25 = vpop.eup %1410 }
 0x482   :  { %v488_v27 = vpack.c.bf16 %v1743_v25, %v1743_v25  ;;  %v722_v34 = vpop.permute.xlu0 %721 }
 0x483   :  { %v727_v35 = vsel %vm270_vm3, %v722_v34, 0 }
 0x484   :  { %1315 = vmatmul.mubr.msk.bf16.vlgmr.msra.gmra.mrb[12].mxu1 %vm149_vm2, %v488_v27 }
 0x485   :  { %v1749_v30 = vpop.eup %1412  ;;  %1325 = vmatpush3.bf16.xpose.msra.mxu1 %v609_v29  ;;  %1326 = vmatprep.mubr.msk.bf16.mxu1 %vm1544_vm0, %v1543_v0 }
 0x486   :  { %v489_v31 = vpack.c.bf16 %v1749_v30, %v1749_v30  ;;  %1336 = vmatprep.subr.bf16.mxu1 %v1543_v0 }
 0x488   :  { %1321 = vmatmul.mubr.msk.bf16.vlgmr.msra.gmra.mrb[16].mxu0 %vm149_vm2, %v489_v31 }
 0x489   :  { %1331 = vmatpush3.bf16.xpose.msra.mxu0 %v659_v33  ;;  %1332 = vmatprep.mubr.msk.bf16.mxu0 %vm1544_vm0, %v1543_v0 }
 0x48a   :  { %1342 = vmatprep.subr.bf16.mxu0 %v1543_v0 }
 0x48c   :  { %1327 = vmatmul.mubr.msk.bf16.vlgmr.msra.gmra.mrb[16].mxu1 %vm149_vm2, %v602_v32 }
 0x48d   :  { %1337 = vmatpush3.bf16.msra.mxu1 %v727_v35  ;;  %1338 = vmatprep.mubr.msk.bf16.mxu1 %vm1544_vm0, %v1543_v0 }
 0x48e   :  { %1348 = vmatprep.subr.bf16.mxu1 %v1543_v0 }
 0x490   :  { %1333 = vmatmul.mubr.msk.bf16.vlgmr.msra.gmra.mrb[20].mxu0 %vm149_vm2, %v652_v28 }
 0x491   :  { %1343 = vmatpush3.bf16.msra.mxu0 %v775_v37  ;;  %1344 = vmatprep.mubr.msk.bf16.mxu0 %vm1544_vm0, %v1543_v0  ;;  %v482_v37 = vsel %vm149_vm2, %v1743_v25, 0.0 }
 0x492   :  { %1354 = vmatprep.subr.bf16.mxu0 %v1543_v0 }
 0x557   :  { %v1771_v38 = vpop.f32.mrb[12].mxu1 }
 0x558   :  { %v1316_v39 = vpop.f32.mrb[13].mxu1 }
 0x559   :  { %v535_v40 = vpop.f32.mrb[14].mxu1 }
 0x55a   :  { %v1317_v41 = vpop.f32.mrb[15].mxu1  ;;  %v485_v40 = vsel %vm149_vm2, %v1749_v30, 0.0 }
 0x55b   :  { %v1773_v42 = vpop.f32.mrb[16].mxu0 }
 0x55c   :  { %v1322_v43 = vpop.f32.mrb[17].mxu0 }
 0x55d   :  { %v583_v44 = vpop.f32.mrb[18].mxu0 }
 0x55e   :  { %v1323_v45 = vpop.f32.mrb[19].mxu0 }
 0x55f   :  { %v645_v47 = vpop.f32.mrb[16].mxu1 }
 0x560   :  { %v1328_v48 = vpop.f32.mrb[17].mxu1  ;;  %v701_v49 = vsel %vm149_vm2, %v645_v47, -inf }
 0x561   :  { %702 = vmax.xlane.f32.xlu1 %v701_v49  ;;  %v648_v51 = vpop.f32.mrb[18].mxu1 }
 0x562   :  { %v1329_v52 = vpop.f32.mrb[19].mxu1 }
 0x563   :  { %v695_v53 = vpop.f32.mrb[20].mxu0 }
 0x564   :  { %v1334_v54 = vpop.f32.mrb[21].mxu0  ;;  %v704_v55 = vsel %vm149_vm2, %v695_v53, -inf }
 0x565   :  { %705 = vmax.xlane.f32.xlu0 %v704_v55  ;;  %v698_v56 = vpop.f32.mrb[22].mxu0  ;;  %v257_v55 = vsel %vm149_vm2, %v1703_v46, 0.0 }
 0x566   :  { %v1335_v58 = vpop.f32.mrb[23].mxu0 }
 0x572   :  { %834 = vrot.lane.b32.xlu1 %v1663_v11, %s1552_s23 }
 0x576   :  { %832 = vrot.lane.b32.xlu1 %v1673_v16, %s1553_s24 }
 0x57b   :  { %884 = vrot.lane.b32.xlu0 %v1666_v14, %s1552_s23 }
 0x57f   :  { %882 = vrot.lane.b32.xlu0 %v1676_v18, %s1553_s24 }
 0x5ee   :  { %v703_v59 = vpop.xlane.xlu1 %702 }
 0x5ef   :  { %v707_v60 = vsub.f32 %v645_v47, %v703_v59  ;;  %v260_v59 = vsel %vm149_vm2, %v1709_v50, 0.0 }
 0x5f1   :  { %v709_v62 = vmul.f32 1.442695, %v707_v60 }
 0x5f2   :  { %v706_v63 = vpop.xlane.xlu0 %705  ;;  %v835_v6 = vpop.permute.xlu1 %834 }
 0x5f3   :  { %1414 = vpow2.f32 %v709_v62  ;;  %v708_v1 = vsub.f32 %v695_v53, %v706_v63  ;;  %v840_v8 = vsel %vm149_vm2, %v835_v6, 0 }
 0x5f5   :  { %v711_v2 = vmul.f32 1.442695, %v708_v1 }
 0x5f6   :  { %v885_v9 = vpop.permute.xlu0 %884  ;;  %v833_v12 = vpop.permute.xlu1 %832 }
 0x5f7   :  { %1416 = vpow2.f32 %v711_v2  ;;  %v890_v10 = vsel %vm149_vm2, %v885_v9, 0 }
 0x5fa   :  { %v883_v13 = vpop.permute.xlu0 %882 }
 0x5fd   :  { %v1415_v5 = vpop.eup %1414 }
 0x5fe   :  { %v719_v7 = vpack.c.bf16 %v1415_v5, %v1415_v5  ;;  %v713_v41 = vsel %vm149_vm2, %v1415_v5, 0.0 }
 0x600   :  { %1339 = vmatmul.mubr.msk.bf16.vlgmr.msra.gmra.mrb[20].mxu1 %vm149_vm2, %v719_v7 }
 0x601   :  { %v1417_v16 = vpop.eup %1416  ;;  %1349 = vmatpush3.bf16.xpose.msra.mxu1 %v840_v8  ;;  %1350 = vmatprep.mubr.msk.bf16.mxu1 %vm1544_vm0, %v1543_v0 }
 0x602   :  { %v720_v18 = vpack.c.bf16 %v1417_v16, %v1417_v16  ;;  %1360 = vmatprep.subr.bf16.mxu1 %v1543_v0  ;;  %v716_v39 = vsel %vm149_vm2, %v1417_v16, 0.0 }
 0x604   :  { %1345 = vmatmul.mubr.msk.bf16.vlgmr.msra.gmra.mrb[24].mxu0 %vm149_vm2, %v720_v18 }
 0x605   :  { %1355 = vmatpush3.bf16.xpose.msra.mxu0 %v890_v10  ;;  %1356 = vmatprep.mubr.msk.bf16.mxu0 %vm1544_vm0, %v1543_v0 }
 0x606   :  { %1366 = vmatprep.subr.bf16.mxu0 %v1543_v0 }
 0x608   :  { %1351 = vmatmul.mubr.msk.bf16.vlgmr.msra.gmra.mrb[24].mxu1 %vm149_vm2, %v833_v12 }
 0x609   :  { %1362 = vmatprep.mubr.msk.bf16.mxu1 %vm1544_vm0, %v1543_v0 }
 0x60c   :  { %1357 = vmatmul.mubr.msk.bf16.vlgmr.msra.gmra.mrb[28].mxu0 %vm149_vm2, %v883_v13 }
 0x60d   :  { %1368 = vmatprep.mubr.msk.bf16.mxu0 %vm1544_vm0, %v1543_v0 }
 0x6d3   :  { %v1797_v15 = vpop.f32.mrb[20].mxu1 }
 0x6d4   :  { %v1340_v17 = vpop.f32.mrb[21].mxu1 }
 0x6d5   :  { %v766_v19 = vpop.f32.mrb[22].mxu1 }
 0x6d6   :  { %v1341_v20 = vpop.f32.mrb[23].mxu1 }
 0x6d7   :  { %v1799_v21 = vpop.f32.mrb[24].mxu0 }
 0x6d8   :  { %v1346_v22 = vpop.f32.mrb[25].mxu0 }
 0x6d9   :  { %v814_v23 = vpop.f32.mrb[26].mxu0  ;;  %v1405_v22 = vld [vmem:[#allocation8 + $0x8] sm:$0xff]  }
 0x6da   :  { %v1347_v24 = vpop.f32.mrb[27].mxu0 }
 0x6db   :  { %v876_v26 = vpop.f32.mrb[24].mxu1 }
 0x6dc   :  { %v1352_v27 = vpop.f32.mrb[25].mxu1  ;;  %v932_v28 = vsel %vm149_vm2, %v876_v26, -inf }
 0x6dd   :  { %933 = vmax.xlane.f32.xlu1 %v932_v28  ;;  %v879_v29 = vpop.f32.mrb[26].mxu1 }
 0x6de   :  { %v1353_v31 = vpop.f32.mrb[27].mxu1 }
 0x6df   :  { %v926_v32 = vpop.f32.mrb[28].mxu0 }
 0x6e0   :  { %v1358_v33 = vpop.f32.mrb[29].mxu0  ;;  %v935_v34 = vsel %vm149_vm2, %v926_v32, -inf }
 0x6e1   :  { %936 = vmax.xlane.f32.xlu0 %v935_v34  ;;  %v929_v35 = vpop.f32.mrb[30].mxu0 }
 0x6e2   :  { %v1359_v36 = vpop.f32.mrb[31].mxu0 }
 0x6ee   :  { %1000 = vrot.lane.b32.xlu1 %v1666_v14, %s1554_s26 }
 0x6f7   :  { %952 = vrot.lane.b32.xlu0 %v1663_v11, %s1554_s26 }
 0x712   :  { %483 = vadd.xlane.f32.xlu1 %v482_v37 }
 0x716   :  { %717 = vadd.xlane.f32.xlu1 %v716_v39  ;;  %486 = vadd.xlane.f32.xlu0 %v485_v40 }
 0x71a   :  { %714 = vadd.xlane.f32.xlu0 %v713_v41  ;;  %v1224_v41 = vld [vmem:[%s1872_s4] ss:$0 sm:$0xff] }
 0x76a   :  { %v934_v43 = vpop.xlane.xlu1 %933 }
 0x76b   :  { %v938_v44 = vsub.f32 %v876_v26, %v934_v43 }
 0x76d   :  { %v940_v45 = vmul.f32 1.442695, %v938_v44 }
 0x76e   :  { %v1001_v14 = vpop.permute.xlu1 %1000  ;;  %v937_v47 = vpop.xlane.xlu0 %936 }
 0x76f   :  { %1418 = vpow2.f32 %v940_v45  ;;  %v1006_v11 = vsel %vm270_vm3, %v1001_v14, 0  ;;  %v939_v25 = vsub.f32 %v926_v32, %v937_v47 }
 0x770   :  { %1367 = vmatpush3.bf16.msra.mxu0 %v1006_v11 }
 0x771   :  { %v942_v48 = vmul.f32 1.442695, %v939_v25 }
 0x772   :  { %v953_v49 = vpop.permute.xlu0 %952 }
 0x773   :  { %1420 = vpow2.f32 %v942_v48  ;;  %v958_v30 = vsel %vm270_vm3, %v953_v49, 0 }
 0x774   :  { %1361 = vmatpush3.bf16.msra.mxu1 %v958_v30 }
 0x775   :  { %1372 = vmatprep.subr.bf16.mxu1 %v1543_v0 }
 0x779   :  { %v1419_v51 = vpop.eup %1418 }
 0x77a   :  { %v944_v52 = vsel %vm149_vm2, %v1419_v51, 0.0  ;;  %v950_v53 = vpack.c.bf16 %v1419_v51, %v1419_v51 }
 0x77b   :  { %945 = vadd.xlane.f32.xlu0 %v944_v52 }
 0x77c   :  { %1363 = vmatmul.mubr.msk.bf16.vlgmr.msra.gmra.mrb[28].mxu1 %vm149_vm2, %v950_v53 }
 0x77d   :  { %v1421_v54 = vpop.eup %1420  ;;  %1376 = vmatprep.mubr.msk.bf16.mxu1 %vm1544_vm0, %v1543_v0 }
 0x77e   :  { %v947_v56 = vsel %vm149_vm2, %v1421_v54, 0.0  ;;  %v951_v58 = vpack.c.bf16 %v1421_v54, %v1421_v54 }
 0x77f   :  { %258 = vadd.xlane.f32.xlu0 %v257_v55  ;;  %948 = vadd.xlane.f32.xlu1 %v947_v56 }
 0x780   :  { %1369 = vmatmul.mubr.msk.bf16.vlgmr.msra.gmra.mrb[32].mxu0 %vm149_vm2, %v951_v58 }
 0x783   :  { %261 = vadd.xlane.f32.xlu1 %v260_v59 }
 0x79f   :  { %v484_v60 = vpop.xlane.xlu1 %483 }
 0x7a0   :  { %1422 = vrcp.f32 %v484_v60 }
 0x7a3   :  { %v718_v62 = vpop.xlane.xlu1 %717  ;;  %v487_v63 = vpop.xlane.xlu0 %486 }
 0x7a4   :  { %1424 = vrcp.f32 %v718_v62 }
 0x7a5   :  { %1426 = vrcp.f32 %v487_v63 }
 0x7a7   :  { %v715_v1 = vpop.xlane.xlu0 %714 }
 0x7a8   :  { %1428 = vrcp.f32 %v715_v1 }
 0x7aa   :  { %v1423_v46 = vpop.eup %1422 }
 0x7ab   :  { %v588_v2 = vmul.f32 %v1423_v46, %v1771_v38 }
 0x7ad   :  { %592 = vrot.lane.b32.xlu0 %v588_v2, %s1541_s25 }
 0x7ae   :  { %v1425_v5 = vpop.eup %1424 }
 0x7af   :  { %v1427_v6 = vpop.eup %1426  ;;  %v820_v7 = vmul.f32 %v1425_v5, %v1799_v21 }
 0x7b0   :  { %v589_v50 = vmul.f32 %v1427_v6, %v1773_v42 }
 0x7b1   :  { %825 = vrot.lane.b32.xlu0 %v820_v7, %s1555_s27 }
 0x7b2   :  { %v1429_v8 = vpop.eup %1428  ;;  %594 = vrot.lane.b32.xlu1 %v589_v50, %s1541_s25 }
 0x7b3   :  { %v819_v16 = vmul.f32 %v1429_v8, %v1797_v15  ;;  %v1228_v8 = vld [vmem:[%s1873_s5] ss:$0 sm:$0xff]  ;;  %s1508_s5 = scalar_lea.vmem %s1192_s14, 256 }
 0x7b4   :  { %p1509_p10 = scmp.ne.s32.totalorder %s1192_s14, %s1508_s5  ;;  %p1514_p12 = scmp.lt.s32.totalorder %s1508_s5, %s1508_s5 }
 0x7b6   :  { %823 = vrot.lane.b32.xlu1 %v819_v16, %s1555_s27  ;;  %p1515_p13 = por %p1514_p12, %p1513_p11 }
 0x7b8   :  { %p1516_p0 = pnand %p1515_p13, %p1509_p10 }
 0x808   :  { %v946_v9 = vpop.xlane.xlu0 %945 }
 0x80c   :  { %v949_v18 = vpop.xlane.xlu1 %948  ;;  %v259_v10 = vpop.xlane.xlu0 %258 }
 0x80d   :  { %1430 = vrcp.f32 %v259_v10  ;;  %v1229_v10 = vld [vmem:[%s1874_s6] ss:$0 sm:$0xff] }
 0x810   :  { %v262_v38 = vpop.xlane.xlu1 %261 }
 0x811   :  { %1432 = vrcp.f32 %v262_v38 }
 0x812   :  { %1434 = vrcp.f32 %v946_v9 }
 0x813   :  { %1436 = vrcp.f32 %v949_v18 }
 0x817   :  { %v1431_v12 = vpop.eup %1430 }
 0x818   :  { %v364_v13 = vmul.f32 %v1431_v12, %v1731_v57  ;;  %v1404_v57 = vld [vmem:[#allocation8] sm:$0xff]  }
 0x819   :  { %1373 = vmatpush3.bf16.msra.mxu1 %v1404_v57 }
 0x81a   :  { %366 = vst.msk [vmem:[#allocation2] sm:$0xff] %vm149_vm2, %v364_v13  ;;  %1374 = vmatprep.subr.bf16.mxu1 %v1543_v0 }
 0x81b   :  { %v1433_v17 = vpop.eup %1432 }
 0x81c   :  { %v365_v42 = vmul.f32 %v1433_v17, %v1733_v61  ;;  %v1435_v61 = vpop.eup %1434 }
 0x81d   :  { %1375 = vmatpush3.bf16.msra.mxu1 %v1405_v22  ;;  %v1437_v29 = vpop.eup %1436 }
 0x81e   :  { %367 = vst.msk [vmem:[#allocation2 + $0x8] sm:$0xff] %vm149_vm2, %v365_v42 }
 0x81f   :  { %v593_v19 = vpop.permute.xlu0 %592 }
 0x820   :  { %599 = vst.msk [vmem:[#allocation2] sm:$0xff] %vm598_vm4, %v593_v19 }
 0x823   :  { %v826_v15 = vpop.permute.xlu0 %825 }
 0x824   :  { %v595_v20 = vpop.permute.xlu1 %594 }
 0x825   :  { %600 = vst.msk [vmem:[#allocation2 + $0x8] sm:$0xff] %vm598_vm4, %v595_v20 }
 0x826   :  { %831 = vst.msk [vmem:[#allocation2 + $0x8] sm:$0xff] %vm829_vm5, %v826_v15 }
 0x828   :  { %v824_v21 = vpop.permute.xlu1 %823 }
 0x829   :  { %830 = vst.msk [vmem:[#allocation2] sm:$0xff] %vm829_vm5, %v824_v21 }
 0x84f   :  { %v994_v23 = vpop.f32.mrb[28].mxu1 }
 0x850   :  { %v1050_v24 = vmul.f32 %v1435_v61, %v994_v23  ;;  %v1364_v26 = vpop.f32.mrb[29].mxu1 }
 0x851   :  { %v997_v27 = vpop.f32.mrb[30].mxu1 }
 0x852   :  { %v1365_v28 = vpop.f32.mrb[31].mxu1  ;;  %1054 = vrot.lane.b32.xlu1 %v1050_v24, %s1556_s28 }
 0x853   :  { %v1042_v31 = vpop.f32.mrb[32].mxu0 }
 0x854   :  { %v1051_v32 = vmul.f32 %v1437_v29, %v1042_v31  ;;  %v1370_v33 = vpop.f32.mrb[33].mxu0 }
 0x855   :  { %v1045_v34 = vpop.f32.mrb[34].mxu0 }
 0x856   :  { %1056 = vrot.lane.b32.xlu0 %v1051_v32, %s1556_s28  ;;  %v1371_v35 = vpop.f32.mrb[35].mxu0 }
 0x8c4   :  { %v1055_v36 = vpop.permute.xlu1 %1054 }
 0x8c5   :  { %1061 = vst.msk [vmem:[#allocation2] sm:$0xff] %vm1060_vm6, %v1055_v36 }
 0x8c8   :  { %v1057_v0 = vpop.permute.xlu0 %1056 }
 0x8c9   :  { %1062 = vst.msk [vmem:[#allocation2 + $0x8] sm:$0xff] %vm1060_vm6, %v1057_v0 }
 0x8cc   :  { %v1063_v37 = vld [vmem:[#allocation2] sm:$0xff] }
 0x8d0   :  { %v1064_v39 = vld [vmem:[#allocation2 + $0x8] sm:$0xff] }
 0x8d1   :  { %v1065_v40 = vpack.c.bf16 %v1064_v39, %v1063_v37 }
 0x8d3   :  { %1377 = vmatmul.mubr.msk.bf16.vlgmr.msra.gmra.mrb[32].mxu1 %vm95_vm1, %v1065_v40 }
 0x9a6   :  { %v1126_v43 = vpop.f32.mrb[32].mxu1 }
 0x9a7   :  { %v1127_v44 = vadd.f32 %v1224_v41, %v1126_v43  ;;  %v1378_v45 = vpop.f32.mrb[33].mxu1 }
 0x9a8   :  { %v1129_v14 = vpop.f32.mrb[34].mxu1 }
 0x9a9   :  { %v1133_v47 = vadd.f32 %v1127_v44, %v1649_v3  ;;  %v1130_v11 = vadd.f32 %v1224_v41, %v1129_v14  ;;  %v1379_v25 = vpop.f32.mrb[35].mxu1 }
 0x9ab   :  { %v1134_v48 = vadd.f32 %v1130_v11, %v1651_v4  ;;  %v1135_v49 = vsel %vm95_vm1, %v1133_v47, 0.0  ;;  %v1144_v52 = vmul.f32 %v1133_v47, %v1133_v47 }
 0x9ac   :  { %1136 = vadd.xlane.f32.xlu1 %v1135_v49 }
 0x9ad   :  { %v1138_v30 = vsel %vm95_vm1, %v1134_v48, 0.0  ;;  %v1145_v51 = vmul.f32 %v1134_v48, %v1134_v48  ;;  %v1146_v54 = vsel %vm95_vm1, %v1144_v52, 0.0 }
 0x9ae   :  { %1139 = vadd.xlane.f32.xlu0 %v1138_v30 }
 0x9af   :  { %v1149_v53 = vsel %vm95_vm1, %v1145_v51, 0.0 }
 0x9b0   :  { %1150 = vadd.xlane.f32.xlu1 %v1149_v53 }
 0x9b2   :  { %1147 = vadd.xlane.f32.xlu0 %v1146_v54 }
 0xa39   :  { %v1137_v55 = vpop.xlane.xlu1 %1136 }
 0xa3a   :  { %v1142_v56 = vmul.f32 0.03125, %v1137_v55 }
 0xa3b   :  { %v1140_v3 = vpop.xlane.xlu0 %1139 }
 0xa3c   :  { %v1143_v58 = vmul.f32 0.03125, %v1140_v3  ;;  %v1154_v63 = vmul.f32 %v1142_v56, %v1142_v56  ;;  %v1158_v16 = vsub.f32 %v1133_v47, %v1142_v56 }
 0xa3d   :  { %v1151_v59 = vpop.xlane.xlu1 %1150 }
 0xa3e   :  { %v1155_v4 = vmul.f32 %v1143_v58, %v1143_v58  ;;  %v1153_v60 = vmul.f32 0.03125, %v1151_v59  ;;  %v1159_v7 = vsub.f32 %v1134_v48, %v1143_v58 }
 0xa3f   :  { %v1148_v62 = vpop.xlane.xlu0 %1147 }
 0xa40   :  { %v1157_v1 = vsub.f32 %v1153_v60, %v1155_v4  ;;  %v1152_v46 = vmul.f32 0.03125, %v1148_v62 }
 0xa42   :  { %v1161_v2 = vadd.f32 1e-05, %v1157_v1  ;;  %v1156_v5 = vsub.f32 %v1152_v46, %v1154_v63 }
 0xa44   :  { %1438 = vrsqrt.f32 %v1161_v2  ;;  %v1160_v6 = vadd.f32 1e-05, %v1156_v5 }
 0xa46   :  { %1440 = vrsqrt.f32 %v1160_v6 }
 0xa4e   :  { %v1439_v50 = vpop.eup %1438 }
 0xa4f   :  { %v1165_v9 = vmul.f32 %v1439_v50, %v1159_v7 }
 0xa50   :  { %v1441_v18 = vpop.eup %1440 }
 0xa51   :  { %v1164_v38 = vmul.f32 %v1441_v18, %v1158_v16  ;;  %v1174_v12 = vmul.f32 %v1228_v8, %v1165_v9 }
 0xa53   :  { %v1173_v13 = vmul.f32 %v1228_v8, %v1164_v38  ;;  %v1183_v17 = vadd.f32 %v1229_v10, %v1174_v12 }
 0xa55   :  { %v1182_v42 = vadd.f32 %v1229_v10, %v1173_v13  ;;  %1185 = vst.msk [vmem:[#allocation9 + $0x8] sm:$0xff] %vm95_vm1, %v1183_v17 }
 0xa57   :  { %1184 = vst.msk [vmem:[#allocation9] sm:$0xff] %vm95_vm1, %v1182_v42 }
 0xa58   :  { %1519 = shalt.err (!%p1516_p0)
}
 0xa59   :  { %s1520_s17 = scalar_lea.hbm %s1875_s7, 256 }
 0xa5a   :  { %p1521_p1 = scmp.ne.s32.totalorder %s1875_s7, %s1520_s17  ;;  %p1524_p2 = scmp.lt.u32.totalorder %s1520_s17, %s1875_s7 }
 0xa5c   :  { %p1526_p3 = pnand %p1524_p2, %p1521_p1 }
 0xa5e   :  { %1529 = shalt.err (!%p1526_p3)
}
 0xa5f   :  { %1197 = dma.vmem_to_hbm [thread:$0]  %s1192_s14, 256, %s1875_s7, [#allocation5], %s1540_s1, %s1540_s1, %s1541_s25  }
 0xa60   :  { %1534 = dma.done.wait [#allocation5], 256  }
 0xa61   :  { %1535 = vsyncadd [#allocation5], 4294967040 }
 0xa62   :  { %1201 = vsyncpa [#allocation4], 1 }
 0xa63   :  { %1202 = vsyncpa [#allocation7], 1 }
 0xa64   :  { %1203 = vsyncpa [#allocation5], 1 }

</bundles_post_ra>
